<compile_context>
chip_gen: v5e
topology: v5e:2x2
jax: 0.10.0
libtpu: 0.0.40
codegen_flags: <defaults>
</compile_context>

<pallas_src>
import functools
import math

import jax
import jax.numpy as jnp
from jax import lax
from jax.experimental import pallas as pl
from jax.experimental.pallas import tpu as pltpu


def _label_smoothing_kernel(x_ref, tgt_ref, out_ref, *,
                            padding_idx, confidence, fill, row_entropy, n_rows):
    x = x_ref[...].astype(jnp.float32)      # (TR, V) log-probabilities
    tgt = tgt_ref[...]                      # (TR, 1) int32 target indices
    tr, v = x.shape

    conf = jnp.float32(confidence)
    fll = jnp.float32(fill)

    # (1, V) column iota; the `col == tgt` compare broadcasts it over rows, so
    # no (TR, V) iota is materialized each grid step.
    col = lax.broadcasted_iota(jnp.int32, (1, v), 1)
    w = jnp.where(col == tgt, conf, fll)                       # (TR, V)

    row_wx = jnp.sum(w * x, axis=-1, keepdims=True)            # (TR, 1)
    x_pad = x[:, padding_idx:padding_idx + 1]                  # static lane slice
    cross = row_wx - fll * x_pad                               # sum_j t*x per row

    # Valid rows: target is not padding AND the row is inside the real array
    # (the last grid block may be a partial block whose out-of-range rows hold
    # unspecified data -- mask them by global row index).
    row_idx = (pl.program_id(0) * tr
               + lax.broadcasted_iota(jnp.int32, (tr, 1), 0))  # (TR, 1)
    valid = (tgt != jnp.int32(padding_idx)) & (row_idx < jnp.int32(n_rows))

    cross = jnp.where(valid, cross, jnp.float32(0.0))
    n_valid = jnp.sum(jnp.where(valid, jnp.float32(1.0), jnp.float32(0.0)),
                      axis=0, keepdims=True)                   # (1, 1)

    # KLDivLoss(reduction='sum') contribution of this block:
    #   sum_rows [ row_entropy (valid rows only) - sum_j t*x ]
    block_total = (jnp.float32(row_entropy) * n_valid
                   - jnp.sum(cross, axis=0, keepdims=True))    # (1, 1)
    out_ref[...] = block_total.reshape(1, 1, 1)


def _xlogx(v):
    return float(v) * math.log(float(v)) if v > 0.0 else 0.0


def _pick_row_tile(n_rows, vocab, itemsize, target_bytes=4 << 20):
    """Row tile whose x block is <= target_bytes; multiple of 8 (16 for bf16)."""
    gran = 16 if itemsize == 2 else 8
    max_rows = max(gran, target_bytes // max(1, vocab * itemsize))
    rt = max(gran, (min(n_rows, int(max_rows)) // gran) * gran)
    # Megacore (v7x has 2 TensorCores): keep at least 2 blocks when there are
    # enough rows, so the "parallel" grid axis actually shards across cores.
    half = ((n_rows // 2) // gran) * gran
    if half >= gran:
        rt = min(rt, half)
    return rt


def label_smoothing_loss(x, target, *, vocab_size, padding_idx,
                         smoothing=0.1, row_tile=None):
    """x: (B, S, V) log-probs (f32 or bf16); target: (B, S) ints. Scalar loss."""
    b, s, v = x.shape
    assert v == vocab_size
    assert vocab_size > 2, "smoothing/(vocab_size-2) requires vocab_size > 2"
    n = b * s

    x2 = x.reshape(n, v)
    tgt2 = target.reshape(n, 1).astype(jnp.int32)
    itemsize = x2.dtype.itemsize

    if row_tile is None:
        row_tile = _pick_row_tile(n, v, itemsize)
    num_blocks = pl.cdiv(n, row_tile)           # tail block masked in-kernel

    confidence = 1.0 - smoothing
    fill = smoothing / (vocab_size - 2)
    # Closed-form per-valid-row entropy term sum_j t*log(t): one scalar,
    # computed once at trace time (no in-kernel jnp.log over the tile).
    row_entropy = _xlogx(confidence) + (vocab_size - 2) * _xlogx(fill)

    kernel = functools.partial(
        _label_smoothing_kernel,
        padding_idx=padding_idx,
        confidence=confidence,
        fill=fill,
        row_entropy=row_entropy,
        n_rows=n,
    )

    # Explicit VMEM budget: double-buffered x block + double-buffered
    # lane-padded target block + slack.  Decoupled from per-generation scoped
    # defaults (16 MiB v5e / 32 MiB v6e,v7x).
    x_block_bytes = row_tile * v * itemsize
    tgt_block_bytes = row_tile * 128 * 4
    vmem_limit = 2 * x_block_bytes + 2 * tgt_block_bytes + (2 << 20)

    cost = pl.CostEstimate(
        flops=5 * n * v,
        transcendentals=0,
        bytes_accessed=n * v * itemsize + n * 4 + num_blocks * 4,
    )

    partials = pl.pallas_call(
        kernel,
        out_shape=jax.ShapeDtypeStruct((num_blocks, 1, 1), jnp.float32),
        grid=(num_blocks,),
        in_specs=[
            pl.BlockSpec((row_tile, v), lambda i: (i, 0)),   # x rows
            pl.BlockSpec((row_tile, 1), lambda i: (i, 0)),   # targets
        ],
        out_specs=pl.BlockSpec((1, 1, 1), lambda i: (i, 0, 0)),  # per-block partial
        compiler_params=pltpu.CompilerParams(
            dimension_semantics=("parallel",),
            vmem_limit_bytes=int(vmem_limit)),
        cost_estimate=cost,
    )(x2, tgt2)

    return jnp.sum(partials)


def _reference_loss(x, target, *, vocab_size, padding_idx, smoothing):
    # Plain-JAX reference mirroring the PyTorch forward exactly.
    b, s, v = x.shape
    x2 = x.reshape(-1, v).astype(jnp.float32)
    tgt = target.reshape(-1)
    n = x2.shape[0]
    confidence = 1.0 - smoothing
    fill = smoothing / (vocab_size - 2)
    true_dist = jnp.full((n, v), fill, dtype=jnp.float32)
    true_dist = true_dist.at[jnp.arange(n), tgt].set(confidence)
    true_dist = true_dist.at[:, padding_idx].set(0.0)
    true_dist = jnp.where((tgt == padding_idx)[:, None], 0.0, true_dist)
    tlogt = jnp.where(true_dist > 0, true_dist * jnp.log(
        jnp.where(true_dist > 0, true_dist, 1.0)), 0.0)
    return jnp.sum(tlogt - true_dist * x2)


if __name__ == "__main__":
    # Module config (deterministic, synthetic).
    vocab_size = 32
    padding_idx = 0
    smoothing = 0.1

    # N = 18 rows: not a multiple of 8, so the cdiv grid + tail-row masking and
    # the >=2-block (megacore) path are both exercised.
    batch, seq = 2, 9

    key = jax.random.PRNGKey(0)
    k_logits, k_tgt = jax.random.split(key)

    logits = jax.random.normal(k_logits, (batch, seq, vocab_size), jnp.float32)
    x = jax.nn.log_softmax(logits, axis=-1)  # KLDivLoss expects log-probs

    target = jax.random.randint(k_tgt, (batch, seq), 0, vocab_size, jnp.int32)
    # Force a few padding positions so the padding-row masking path is exercised.
    target = target.at[:, -2:].set(padding_idx)

    loss = label_smoothing_loss(
        x, target,
        vocab_size=vocab_size, padding_idx=padding_idx, smoothing=smoothing,
    )
    loss = jax.block_until_ready(loss)

    ref = _reference_loss(
        x, target,
        vocab_size=vocab_size, padding_idx=padding_idx, smoothing=smoothing,
    )
    assert jnp.allclose(loss, ref, rtol=1e-5, atol=1e-5), (loss, ref)

    print("KERNEL_OK")
</pallas_src>

<mosaic_0001>
module attributes {stable_mosaic.version = 11 : i64} {
  func.func @_label_smoothing_kernel(%arg0: i32, %arg1: memref<8x32xf32, #tpu.memory_space<vmem>>, %arg2: memref<8x1xi32, #tpu.memory_space<vmem>>, %arg3: memref<1x1x1xf32, #tpu.memory_space<vmem>>) attributes {dimension_semantics = [#tpu.dimension_semantics<parallel>], iteration_bounds = array<i64: 3>, scalar_prefetch = 0 : i64, scratch_operands = 0 : i64, tpu.core_type = #tpu.core_type<tc>, window_params = [{transform_indices = @transform_0, window_bounds = array<i64: 8, 32>}, {transform_indices = @transform_1, window_bounds = array<i64: 8, 1>}, {transform_indices = @transform_2, window_bounds = array<i64: 1, 1, 1>}]} {
    %c0 = arith.constant 0 : index
    %c0_0 = arith.constant 0 : index
    %0 = vector.load %arg1[%c0, %c0_0] : memref<8x32xf32, #tpu.memory_space<vmem>>, vector<8x32xf32>
    %c0_1 = arith.constant 0 : index
    %c0_2 = arith.constant 0 : index
    %1 = vector.load %arg2[%c0_1, %c0_2] : memref<8x1xi32, #tpu.memory_space<vmem>>, vector<8x1xi32>
    %2 = tpu.iota {dimensions = array<i32: 1>} : vector<1x32xi32>
    %3 = vector.broadcast %2 : vector<1x32xi32> to vector<8x32xi32>
    %4 = vector.broadcast %1 : vector<8x1xi32> to vector<8x32xi32>
    %5 = arith.cmpi eq, %3, %4 : vector<8x32xi32>
    %cst = arith.constant 0.899999976 : f32
    %cst_3 = arith.constant 0.00333333341 : f32
    %6 = vector.broadcast %cst : f32 to vector<8x32xf32>
    %7 = vector.broadcast %cst_3 : f32 to vector<8x32xf32>
    %8 = arith.select %5, %6, %7 : vector<8x32xi1>, vector<8x32xf32>
    %9 = arith.mulf %8, %0 : vector<8x32xf32>
    %cst_4 = arith.constant dense<0.000000e+00> : vector<8xf32>
    %10 = vector.multi_reduction <add>, %9, %cst_4 [1] : vector<8x32xf32> to vector<8xf32>
    %11 = vector.shape_cast %10 : vector<8xf32> to vector<8x1xf32>
    %12 = vector.extract_strided_slice %0 {offsets = [0, 0], sizes = [8, 1], strides = [1, 1]} : vector<8x32xf32> to vector<8x1xf32>
    %cst_5 = arith.constant 0.00333333341 : f32
    %13 = vector.broadcast %cst_5 : f32 to vector<8x1xf32>
    %14 = arith.mulf %13, %12 : vector<8x1xf32>
    %15 = arith.subf %11, %14 : vector<8x1xf32>
    %c8_i32 = arith.constant 8 : i32
    %16 = arith.muli %arg0, %c8_i32 : i32
    %17 = tpu.iota {dimensions = array<i32: 0>} : vector<8x1xi32>
    %18 = vector.broadcast %16 : i32 to vector<8x1xi32>
    %19 = arith.addi %18, %17 : vector<8x1xi32>
    %c0_i32 = arith.constant 0 : i32
    %20 = vector.broadcast %c0_i32 : i32 to vector<8x1xi32>
    %21 = arith.cmpi ne, %1, %20 : vector<8x1xi32>
    %c18_i32 = arith.constant 18 : i32
    %22 = vector.broadcast %c18_i32 : i32 to vector<8x1xi32>
    %23 = arith.cmpi slt, %19, %22 : vector<8x1xi32>
    %24 = arith.andi %21, %23 : vector<8x1xi1>
    %cst_6 = arith.constant 0.000000e+00 : f32
    %25 = vector.broadcast %cst_6 : f32 to vector<8x1xf32>
    %26 = arith.select %24, %15, %25 : vector<8x1xi1>, vector<8x1xf32>
    %cst_7 = arith.constant 1.000000e+00 : f32
    %cst_8 = arith.constant 0.000000e+00 : f32
    %27 = vector.broadcast %cst_7 : f32 to vector<8x1xf32>
    %28 = vector.broadcast %cst_8 : f32 to vector<8x1xf32>
    %29 = arith.select %24, %27, %28 : vector<8x1xi1>, vector<8x1xf32>
    %cst_9 = arith.constant dense<0.000000e+00> : vector<1xf32>
    %30 = vector.multi_reduction <add>, %29, %cst_9 [0] : vector<8x1xf32> to vector<1xf32>
    %31 = vector.shape_cast %30 : vector<1xf32> to vector<1x1xf32>
    %cst_10 = arith.constant -0.665202737 : f32
    %32 = vector.broadcast %cst_10 : f32 to vector<1x1xf32>
    %33 = arith.mulf %32, %31 : vector<1x1xf32>
    %cst_11 = arith.constant dense<0.000000e+00> : vector<1xf32>
    %34 = vector.multi_reduction <add>, %26, %cst_11 [0] : vector<8x1xf32> to vector<1xf32>
    %35 = vector.shape_cast %34 : vector<1xf32> to vector<1x1xf32>
    %36 = arith.subf %33, %35 : vector<1x1xf32>
    %37 = vector.shape_cast %36 : vector<1x1xf32> to vector<1x1x1xf32>
    %c0_12 = arith.constant 0 : index
    %c0_13 = arith.constant 0 : index
    %c0_14 = arith.constant 0 : index
    %38 = vector.load %arg3[%c0_12, %c0_13, %c0_14] : memref<1x1x1xf32, #tpu.memory_space<vmem>>, vector<1x1x1xf32>
    tpu.vector_store %arg3[%c0_12, %c0_13, %c0_14], %37 {strides = array<i32>} : memref<1x1x1xf32, #tpu.memory_space<vmem>>, vector<1x1x1xf32>,
    return
  }
  func.func @transform_0(%arg0: i32) -> (i32, i32) {
    %c0_i32 = arith.constant 0 : i32
    %c0_i32_0 = arith.constant 0 : i32
    return %arg0, %c0_i32 : i32, i32
  }
  func.func @transform_1(%arg0: i32) -> (i32, i32) {
    %c0_i32 = arith.constant 0 : i32
    %c0_i32_0 = arith.constant 0 : i32
    return %arg0, %c0_i32 : i32, i32
  }
  func.func @transform_2(%arg0: i32) -> (i32, i32, i32) {
    %c0_i32 = arith.constant 0 : i32
    %c0_i32_0 = arith.constant 0 : i32
    %c0_i32_1 = arith.constant 0 : i32
    return %arg0, %c0_i32, %c0_i32_0 : i32, i32, i32
  }
}

</mosaic_0001>

<bundles_post_ra>
// kernel: tpu_custom_call.1
= control target key start
LH: loop header
LB: loop body
LE: loop exit
PB: predicated region body
PF: predicated region fallthrough
CT: control target
= control target key end

     0   :  { %s306_s9 = smov 0   ;;  %s338_s0 = inlined_call_operand.vmem [shape: f32[18,32], index: 0, kind: input, shape index: {}]   ;;  %s339_s1 = inlined_call_operand.vmem [shape: s32[18,1], index: 1, kind: input, shape index: {}]   ;;  %s340_s2 = inlined_call_operand.vmem [shape: f32[3,1,1], index: 2, kind: output, shape index: {}]  }
   0x1 LB: > { %s258_s10 = sadd.s32 4294967295, %s286_s9   ;;  %p262_p0 = scmp.ge.s32.totalorder %s286_s9, 1  ;;  %s286_s9 = sphi %s306_s9, %s12_s9  }
   0x2   : > { %p120_p1 = scmp.lt.s32.totalorder %s286_s9, 4 }
   0x4   : > { %p121_p2 = pnand %p262_p0, %p120_p1 }
   0x5   : > { %p143_p3 = scmp.lt.s32.totalorder (!%p121_p2), %s258_s10, 2  ;;  %s265_s11 = sshll.u32 (!%p121_p2), %s258_s10, 3 }
   0x6   : > { %124 = sbr.rel (%p121_p2) target bundleno = 270 (0x10e), region = 28 }
   0xb   : > { %v156_v0 = vlaneseq  ;;  %v288_v1 = vmov 0   ;;  %v173_v2 = vstv %s265_s11  ;;  %s344_s10 = smov (!%p143_p3, %s258_s10), 2  ;;  %v289_v10 = vmov 0.0033333334  }
   0xc   : > { %279 = vset.pattern.permute.xlu0 %v288_v1  ;;  %s263_s12 = sshll.u32 %s344_s10, 3  ;;  %vm164_vm4 = vcmask 261120   ;;  %vm180_vm5 = vcmask 7168   ;;  %v290_v14 = vmov 0.0   ;;  %s153_s21 = scalar_lea.vmem %s340_s2, %s344_s10  ;;  %vm197_vm6 = vcmask 0  }
   0xd   : > { %v172_v3 = vshrl.u32 %v156_v0, 7  ;;  %s150_s15 = scalar_lea.vmem %s339_s1, %s263_s12  ;;  %s146_s18 = scalar_lea.vmem %s338_s0, %s263_s12  ;;  %v157_v7 = vand.u32 127, %v156_v0 }
   0xe   : > { %v155_v5 = vld [vmem:[%s150_s15] sm:$0xff] }
   0xf   : > { %v174_v4 = vadd.s32 %v173_v2, %v172_v3  ;;  %159 = vperm.xlu0 %279, %v155_v5   ;;  %vm175_vm1 = vcmp.ne.s32.totalorder %v155_v5, 0  ;;  %v154_v8 = vld [vmem:[%s146_s18] sm:$0xff] }
  0x10   : > { %v168_v20 = vmul.f32 0.0033333334, %v154_v8 }
  0x11   : > { %vm176_vm0 = vcmp.lt.s32.totalorder %v174_v4, 18 }
  0x12   : > { %vm320_vm2 = vmand %vm175_vm1, %vm176_vm0 }
  0x13   : > { %v179_v15 = vsel %vm320_vm2, 1.0, %v290_v14 }
  0x14   : > { %v181_v16 = vsel %vm180_vm5, %v179_v15, 0.0 }
  0x15   : > { %v182_v17 = vrot.slane %v181_v16, 4 }
  0x17   : > { %v183_v18 = vadd.f32 %v182_v17, %v181_v16 }
  0x19   : > { %v184_v19 = vrot.slane %v183_v18, 2 }
  0x1b   : > { %v185_v22 = vadd.f32 %v184_v19, %v183_v18 }
  0x1d   : > { %v186_v26 = vrot.slane %v185_v22, 1 }
  0x1f   : > { %v187_v29 = vadd.f32 %v186_v26, %v185_v22 }
  0x21   : > { %v188_v32 = vmul.f32 -0.66520274, %v187_v29 }
  0x81   : > { %v160_v9 = vpop.permute.xlu0 %159 }
  0x82   : > { %vm161_vm3 = vcmp.eq.s32.totalorder %v157_v7, %v160_v9 }
  0x83   : > { %v162_v11 = vsel %vm161_vm3, 0.9, %v289_v10 }
  0x84   : > { %v163_v12 = vmul.f32 %v162_v11, %v154_v8 }
  0x86   : > { %v165_v13 = vsel %vm164_vm4, %v163_v12, 0.0 }
  0x87   : > { %166 = vadd.xlane.f32.xlu0 %v165_v13 }
  0xfa   : > { %v167_v21 = vpop.xlane.xlu0 %166 }
  0xfb   : > { %v169_v23 = vsub.f32 %v167_v21, %v168_v20 }
  0xfd   : > { %v178_v24 = vsel %vm320_vm2, %v169_v23, 0.0 }
  0xfe   : > { %v189_v25 = vsel %vm180_vm5, %v178_v24, 0.0 }
  0xff   : > { %v190_v27 = vrot.slane %v189_v25, 4 }
 0x101   : > { %v191_v28 = vadd.f32 %v190_v27, %v189_v25 }
 0x103   : > { %v192_v30 = vrot.slane %v191_v28, 2 }
 0x105   : > { %v193_v31 = vadd.f32 %v192_v30, %v191_v28 }
 0x107   : > { %v194_v33 = vrot.slane %v193_v31, 1 }
 0x109   : > { %v195_v34 = vadd.f32 %v194_v33, %v193_v31 }
 0x10b   : > { %v196_v35 = vsub.f32 %v188_v32, %v195_v34 }
 0x10d   : > { %198 = vst.msk [vmem:[%s153_s21] sm:$0x1] %vm197_vm6, %v196_v35 }
 0x10e PF: > { %s12_s9 = sadd.s32 1, %s286_s9  }
 0x10f   : > { %p9_p4 = scmp.ge.s32.totalorder %s12_s9, 5  }
 0x111   :  { %11 = sbr.rel (!%p9_p4) target bundleno = 1 (0x1), region = 61 }

</bundles_post_ra>
